<compile_context>
chip_gen: v7x
topology: tpu7x:2x2x1
jax: 0.10.0
libtpu: 0.0.40
codegen_flags: <defaults>
</compile_context>

<pallas_src>
import jax
import jax.numpy as jnp
from jax.experimental import pallas as pl
from jax.experimental.pallas import tpu as pltpu

LANES = 128
_DEFAULT_MAX_BLOCK_ROWS = 4096        # 4096 x 128 x 4 B = 2 MiB per f32 chunk
_FUSED_MAX_ROWS = 8192                # single fused block up to 4 MiB f32 (1M elements)
_VMEM_LIMIT_BYTES = 32 * 1024 * 1024  # explicit scoped-VMEM limit, portable across chips


def _cdiv(a: int, b: int) -> int:
    return -(-a // b)


def _round_up(a: int, b: int) -> int:
    return _cdiv(a, b) * b


def _sublane_multiple(dtype) -> int:
    # 8 sublanes of 32-bit words per vreg; sub-32-bit dtypes pack along sublanes.
    return max(8, 32 // jnp.dtype(dtype).itemsize)


# --------------------------- single-block fused kernel ---------------------------

def _make_fused_kernel(block_rows: int, valid_rows: int, needs_row_mask: bool):
    def kernel(x_ref, o_ref):
        x = x_ref[...].astype(jnp.float32)                    # native-dtype DMA, VPU upcast
        if needs_row_mask:
            row = jax.lax.broadcasted_iota(jnp.int32, (block_rows, LANES), 0)
            x = jnp.where(row < valid_rows, x, -jnp.inf)      # rows past the end are garbage
        m = jnp.max(x, axis=(0, 1), keepdims=True)            # (1, 1) global max
        e = jnp.exp(x - m)                                    # -inf padding -> exp == 0
        inv_l = 1.0 / jnp.sum(e, axis=(0, 1), keepdims=True)  # one exact reciprocal
        o_ref[...] = (e * inv_l).astype(o_ref.dtype)          # vector multiply, no divides
    return kernel


# --------------- pass 1: online (flash-style) global max / sum -------------------

def _make_stats_kernel(block_rows: int, valid_rows: int, needs_row_mask: bool):
    def kernel(x_ref, m_out_ref, linv_out_ref, m_sc, l_sc):
        i = pl.program_id(0)

        @pl.when(i == 0)
        def _():
            m_sc[...] = jnp.full_like(m_sc, -jnp.inf)
            l_sc[...] = jnp.zeros_like(l_sc)

        x = x_ref[...].astype(jnp.float32)                    # (block_rows, 128)
        if needs_row_mask:
            row = jax.lax.broadcasted_iota(jnp.int32, (block_rows, LANES), 0)
            x = jnp.where(i * block_rows + row < valid_rows, x, -jnp.inf)

        m_prev = m_sc[...]                                    # (1, 1)
        m_new = jnp.maximum(m_prev, jnp.max(x))               # (1, 1)
        l_sc[...] = l_sc[...] * jnp.exp(m_prev - m_new) + jnp.sum(jnp.exp(x - m_new))
        m_sc[...] = m_new

        @pl.when(i == pl.num_programs(0) - 1)
        def _():
            m_out_ref[...] = m_sc[...]
            linv_out_ref[...] = 1.0 / l_sc[...]               # exact reciprocal, once
    return kernel


# ------------------------------- pass 2: normalize --------------------------------

def _normalize_kernel(m_ref, linv_ref, x_ref, o_ref):
    x = x_ref[...].astype(jnp.float32)                        # (block_rows, 128)
    o_ref[...] = (jnp.exp(x - m_ref[...]) * linv_ref[...]).astype(o_ref.dtype)


# ----------------------------------- wrapper ---------------------------------------

def softmax_stable(x: jax.Array, *,
                   max_block_rows: int = _DEFAULT_MAX_BLOCK_ROWS,
                   fused_max_rows: int = _FUSED_MAX_ROWS) -> jax.Array:
    """Numerically stable softmax over a 1-D vector, computed with Pallas TPU kernels."""
    assert x.ndim == 1, "SoftmaxStable reference semantics apply to a 1-D tensor"
    assert jnp.issubdtype(x.dtype, jnp.floating)
    n = x.shape[0]
    dtype = x.dtype
    itemsize = jnp.dtype(dtype).itemsize
    sub = _sublane_multiple(dtype)

    rows = _cdiv(n, LANES)
    n_lane_pad = rows * LANES
    if n_lane_pad != n:
        # At most 127 elements of -inf so the reshape to (rows, 128) is legal.
        x = jnp.pad(x, (0, n_lane_pad - n), constant_values=-jnp.inf)
    x2d = x.reshape(rows, LANES)                               # lane-dense, native dtype

    if rows <= fused_max_rows:
        # Whole vector fits in one VMEM block: single fused kernel, 2N HBM traffic.
        block_rows = _round_up(rows, sub)
        needs_mask = block_rows > rows
        out2d = pl.pallas_call(
            _make_fused_kernel(block_rows, rows, needs_mask),
            out_shape=jax.ShapeDtypeStruct((rows, LANES), dtype),
            grid=(1,),
            in_specs=[pl.BlockSpec((block_rows, LANES), lambda i: (0, 0))],
            out_specs=pl.BlockSpec((block_rows, LANES), lambda i: (0, 0)),
            compiler_params=pltpu.CompilerParams(
                dimension_semantics=("arbitrary",),
                vmem_limit_bytes=_VMEM_LIMIT_BYTES),
            cost_estimate=pl.CostEstimate(
                flops=4 * n, transcendentals=n, bytes_accessed=2 * n * itemsize),
        )(x2d)
    else:
        # Balanced chunking: padding per block is < one sublane group.
        num_chunks = _cdiv(rows, max_block_rows)
        block_rows = _round_up(_cdiv(rows, num_chunks), sub)
        needs_mask = num_chunks * block_rows > rows

        # Pass 1: chunked online reduction -> global max m and 1 / sum(exp(x - m)).
        m_out, linv_out = pl.pallas_call(
            _make_stats_kernel(block_rows, rows, needs_mask),
            out_shape=(jax.ShapeDtypeStruct((1, 1), jnp.float32),
                       jax.ShapeDtypeStruct((1, 1), jnp.float32)),
            grid=(num_chunks,),
            in_specs=[pl.BlockSpec((block_rows, LANES), lambda i: (i, 0))],
            out_specs=(pl.BlockSpec((1, 1), lambda i: (0, 0)),
                       pl.BlockSpec((1, 1), lambda i: (0, 0))),
            scratch_shapes=[pltpu.VMEM((1, 1), jnp.float32),
                            pltpu.VMEM((1, 1), jnp.float32)],
            compiler_params=pltpu.CompilerParams(
                dimension_semantics=("arbitrary",),
                vmem_limit_bytes=_VMEM_LIMIT_BYTES),
            cost_estimate=pl.CostEstimate(
                flops=4 * n, transcendentals=n + num_chunks,
                bytes_accessed=n * itemsize + 8),
        )(x2d)

        # Pass 2: chunked, pipelined, embarrassingly parallel normalize.
        out2d = pl.pallas_call(
            _normalize_kernel,
            out_shape=jax.ShapeDtypeStruct((rows, LANES), dtype),
            grid=(num_chunks,),
            in_specs=[pl.BlockSpec((1, 1), lambda i: (0, 0)),
                      pl.BlockSpec((1, 1), lambda i: (0, 0)),
                      pl.BlockSpec((block_rows, LANES), lambda i: (i, 0))],
            out_specs=pl.BlockSpec((block_rows, LANES), lambda i: (i, 0)),
            compiler_params=pltpu.CompilerParams(
                dimension_semantics=("parallel",),
                vmem_limit_bytes=_VMEM_LIMIT_BYTES),
            cost_estimate=pl.CostEstimate(
                flops=2 * n, transcendentals=n,
                bytes_accessed=2 * n * itemsize + 8),
        )(m_out, linv_out, x2d)

    out = out2d.reshape(n_lane_pad)          # bitcast, no copy
    if n_lane_pad != n:
        out = out[:n]
    return out


if __name__ == "__main__":
    key = jax.random.PRNGKey(0)

    def reference(v):
        vf = v.astype(jnp.float32)
        c = jnp.max(vf)
        e = jnp.exp(vf - c)
        return e / jnp.sum(e)

    x_small = jax.random.normal(key, (32,), dtype=jnp.float32) * 5.0
    x_aligned = jax.random.normal(jax.random.fold_in(key, 1), (1024,), dtype=jnp.float32) * 3.0
    x_bf16 = (jax.random.normal(jax.random.fold_in(key, 2), (2048,), dtype=jnp.float32) * 2.0
              ).astype(jnp.bfloat16)
    x_chunked = jax.random.normal(jax.random.fold_in(key, 3), (4096,), dtype=jnp.float32)
    x_chunked_masked = jax.random.normal(jax.random.fold_in(key, 4), (3400,), dtype=jnp.float32)

    cases = [
        # (name, input, kwargs, atol)
        ("small_fused", x_small, {}, 1e-6),                    # tiny vector, lane-tail pad
        ("aligned_fused", x_aligned, {}, 1e-6),                # n % 128 == 0: zero-copy wrapper
        ("bf16_native_dma", x_bf16, {}, 2e-2),                 # native-dtype DMA, in-kernel upcast
        ("chunked_two_pass", x_chunked,
         {"fused_max_rows": 8, "max_block_rows": 8}, 1e-6),    # forces the pipelined 2-pass path
        ("chunked_row_masked", x_chunked_masked,
         {"fused_max_rows": 8, "max_block_rows": 8}, 1e-6),    # partial last block + lane tail
    ]

    for name, xv, kwargs, atol in cases:
        out = softmax_stable(xv, **kwargs)
        jax.block_until_ready(out)
        ref = reference(xv)
        assert out.shape == xv.shape and out.dtype == xv.dtype, name
        assert jnp.allclose(out.astype(jnp.float32), ref, atol=atol, rtol=1e-6), name
        assert jnp.allclose(jnp.sum(out.astype(jnp.float32)), 1.0, atol=max(atol, 1e-5)), name

    print("KERNEL_OK")
</pallas_src>

<mosaic_0001>
module attributes {stable_mosaic.version = 11 : i64} {
  func.func @kernel(%arg0: i32, %arg1: memref<8x128xf32, #tpu.memory_space<vmem>>, %arg2: memref<8x128xf32, #tpu.memory_space<vmem>>) attributes {dimension_semantics = [#tpu.dimension_semantics<arbitrary>], iteration_bounds = array<i64: 1>, scalar_prefetch = 0 : i64, scratch_operands = 0 : i64, tpu.core_type = #tpu.core_type<tc>, window_params = [{transform_indices = @transform_0, window_bounds = array<i64: 8, 128>}, {transform_indices = @transform_1, window_bounds = array<i64: 8, 128>}]} {
    %c0 = arith.constant 0 : index
    %c0_0 = arith.constant 0 : index
    %0 = vector.load %arg1[%c0, %c0_0] : memref<8x128xf32, #tpu.memory_space<vmem>>, vector<8x128xf32>
    %1 = tpu.iota {dimensions = array<i32: 0>} : vector<8x128xi32>
    %c1_i32 = arith.constant 1 : i32
    %2 = vector.broadcast %c1_i32 : i32 to vector<8x128xi32>
    %3 = arith.cmpi slt, %1, %2 : vector<8x128xi32>
    %cst = arith.constant 0xFF800000 : f32
    %4 = vector.broadcast %cst : f32 to vector<8x128xf32>
    %5 = arith.select %3, %0, %4 : vector<8x128xi1>, vector<8x128xf32>
    %6 = vector.shape_cast %5 : vector<8x128xf32> to vector<1x8x128xf32>
    %cst_1 = arith.constant dense<0xFF800000> : vector<1xf32>
    %7 = vector.multi_reduction <maximumf>, %6, %cst_1 [1, 2] : vector<1x8x128xf32> to vector<1xf32>
    %8 = vector.shape_cast %7 : vector<1xf32> to vector<1x1x1xf32>
    %9 = vector.extract %8[0, 0, 0] : f32 from vector<1x1x1xf32>
    %10 = vector.broadcast %9 : f32 to vector<1x1xf32>
    %11 = vector.broadcast %10 : vector<1x1xf32> to vector<8x128xf32>
    %12 = arith.subf %5, %11 : vector<8x128xf32>
    %13 = math.exp %12 : vector<8x128xf32>
    %14 = vector.shape_cast %13 : vector<8x128xf32> to vector<1x8x128xf32>
    %cst_2 = arith.constant dense<0.000000e+00> : vector<1xf32>
    %15 = vector.multi_reduction <add>, %14, %cst_2 [1, 2] : vector<1x8x128xf32> to vector<1xf32>
    %16 = vector.shape_cast %15 : vector<1xf32> to vector<1x1x1xf32>
    %17 = vector.extract %16[0, 0, 0] : f32 from vector<1x1x1xf32>
    %18 = vector.broadcast %17 : f32 to vector<1x1xf32>
    %cst_3 = arith.constant 1.000000e+00 : f32
    %19 = vector.broadcast %cst_3 : f32 to vector<1x1xf32>
    %20 = arith.divf %19, %18 : vector<1x1xf32>
    %21 = vector.broadcast %20 : vector<1x1xf32> to vector<8x128xf32>
    %22 = arith.mulf %13, %21 : vector<8x128xf32>
    %c0_4 = arith.constant 0 : index
    %c0_5 = arith.constant 0 : index
    %23 = vector.load %arg2[%c0_4, %c0_5] : memref<8x128xf32, #tpu.memory_space<vmem>>, vector<8x128xf32>
    tpu.vector_store %arg2[%c0_4, %c0_5], %22 {strides = array<i32>} : memref<8x128xf32, #tpu.memory_space<vmem>>, vector<8x128xf32>,
    return
  }
  func.func @transform_0(%arg0: i32) -> (i32, i32) {
    %c0_i32 = arith.constant 0 : i32
    %c0_i32_0 = arith.constant 0 : i32
    %c0_i32_1 = arith.constant 0 : i32
    return %c0_i32, %c0_i32_0 : i32, i32
  }
  func.func @transform_1(%arg0: i32) -> (i32, i32) {
    %c0_i32 = arith.constant 0 : i32
    %c0_i32_0 = arith.constant 0 : i32
    %c0_i32_1 = arith.constant 0 : i32
    return %c0_i32, %c0_i32_0 : i32, i32
  }
}

</mosaic_0001>

<bundles_post_ra>
// kernel: tpu_custom_call.1
= control target key start
LH: loop header
LB: loop body
LE: loop exit
PB: predicated region body
PF: predicated region fallthrough
CT: control target
= control target key end

     0   :  { %6 = vsyncpa [#allocation3], 0  ;;  %s176_s0 = inlined_call_operand.hbm [shape: f32[1,128], index: 0, kind: input, shape index: {}]   ;;  %s177_s1 = inlined_call_operand.hbm [shape: f32[1,128], index: 1, kind: output, shape index: {}]  }
   0x1   :  { %7 = vsyncpa [#allocation4], 0 }
   0x2   :  { %12 = vsyncadd [#allocation3], 112  ;;  %s132_s6 = smov [#allocation2]   ;;  %s84_s10 = scalar_lea.hbm %s176_s0, 16 }
   0x3   :  { %s13_s7 = sshll.u32 %s132_s6, 4  ;;  %p85_p0 = scmp.ne.s32.totalorder %s176_s0, %s84_s10  ;;  %s14_s7 = int_to_ptr.vmem [resolvable:$true] %s13_s7 }
   0x4   :  { %p88_p1 = scmp.lt.u32.totalorder %s84_s10, %s176_s0 }
   0x6   :  { %p90_p2 = pnand %p88_p1, %p85_p0 }
   0x8   :  { %93 = shalt.err (!%p90_p2)
}
   0x9   :  { %s94_s15 = scalar_lea.vmem %s14_s7, 16  ;;  %s98_s16 = scalar_lea.vmem %s14_s7, 128 }
   0xa   :  { %p95_p3 = scmp.ne.s32.totalorder %s14_s7, %s94_s15  ;;  %p99_p4 = scmp.lt.s32.totalorder %s14_s7, %s14_s7 }
   0xb   :  { %p100_p5 = scmp.lt.s32.totalorder %s98_s16, %s94_s15 }
   0xd   :  { %p101_p6 = por %p100_p5, %p99_p4 }
   0xf   :  { %p102_p7 = pnand %p101_p6, %p95_p3 }
  0x11   :  { %105 = shalt.err (!%p102_p7)
}
  0x12   :  { %s133_s17 = smov 16   ;;  %s134_s18 = smov 1  }
  0x13   :  { %19 = dma.hbm_to_vmem [thread:$0]  %s176_s0, 16, %s14_s7, [#allocation3], %s133_s17, %s133_s17, %s134_s18  }
  0x14   :  { %128 = dma.done.wait [#allocation3], 128  }
  0x15   :  { %129 = vsyncadd [#allocation3], 4294967168  ;;  %v24_v0 = vlaneseq  ;;  %v23_v2 = vld [vmem:[#allocation2] sm:$0xff] }
  0x17   :  { %v25_v1 = vshrl.u32 %v24_v0, 7 }
  0x19   :  { %vm26_vm0 = vcmp.lt.s32.totalorder %v25_v1, 1 }
  0x1a   :  { %v27_v3 = vsel %vm26_vm0, %v23_v2, -inf }
  0x1b   :  { %28 = vmax.xlane.f32.xlu0 %v27_v3 }
  0xa8   :  { %v29_v4 = vpop.xlane.xlu0 %28 }
  0xa9   :  { %v30_v5 = vrot.slane %v29_v4, 4 }
  0xab   :  { %v31_v6 = vmax.f32 %v29_v4, %v30_v5 }
  0xad   :  { %v32_v7 = vrot.slane %v31_v6, 2 }
  0xaf   :  { %v33_v8 = vmax.f32 %v31_v6, %v32_v7 }
  0xb1   :  { %v34_v9 = vrot.slane %v33_v8, 1 }
  0xb3   :  { %v35_v10 = vmax.f32 %v33_v8, %v34_v9 }
  0xb5   :  { %72 = vpush %v35_v10 }
  0xe6   :  { %s73_s21 = spop %72 }
  0xe7   :  { %v37_v11 = vstv %s73_s21 }
  0xe8   :  { %v38_v12 = vsub.f32 %v27_v3, %v37_v11 }
  0xea   :  { %v39_v13 = vmul.f32 1.442695, %v38_v12 }
  0xec   :  { %80 = vpow2.f32 %v39_v13 }
  0xf6   :  { %v81_v14 = vpop.eup %80 }
  0xf7   :  { %41 = vadd.xlane.f32.xlu0 %v81_v14 }
 0x184   :  { %v42_v15 = vpop.xlane.xlu0 %41 }
 0x185   :  { %v43_v16 = vrot.slane %v42_v15, 4 }
 0x187   :  { %v44_v17 = vadd.f32 %v43_v16, %v42_v15 }
 0x189   :  { %v45_v18 = vrot.slane %v44_v17, 2 }
 0x18b   :  { %v46_v19 = vadd.f32 %v45_v18, %v44_v17 }
 0x18d   :  { %v47_v20 = vrot.slane %v46_v19, 1 }
 0x18f   :  { %v48_v21 = vadd.f32 %v47_v20, %v46_v19 }
 0x191   :  { %74 = vpush %v48_v21 }
 0x1c2   :  { %s75_s0 = spop %74 }
 0x1c3   :  { %v50_v22 = vstv %s75_s0 }
 0x1c4   :  { %82 = vrcp.f32 %v50_v22 }
 0x1ce   :  { %v83_v23 = vpop.eup %82 }
 0x1cf   :  { %v53_v24 = vmul.f32 %v83_v23, %v81_v14 }
 0x1d1   :  { %54 = vst [vmem:[#allocation5] sm:$0xff] %v53_v24 }
 0x1d2   :  { %59 = vsyncadd [#allocation4], 112  ;;  %s135_s22 = smov [#allocation5]  }
 0x1d3   :  { %s60_s23 = sshll.u32 %s135_s22, 4  ;;  %s61_s23 = int_to_ptr.vmem [resolvable:$true] %s60_s23 }
 0x1d4   :  { %s106_s24 = scalar_lea.vmem %s61_s23, 16  ;;  %s110_s25 = scalar_lea.vmem %s61_s23, 128 }
 0x1d5   :  { %p107_p8 = scmp.ne.s32.totalorder %s61_s23, %s106_s24  ;;  %p111_p9 = scmp.lt.s32.totalorder %s61_s23, %s61_s23 }
 0x1d6   :  { %p112_p10 = scmp.lt.s32.totalorder %s110_s25, %s106_s24 }
 0x1d8   :  { %p113_p11 = por %p112_p10, %p111_p9 }
 0x1da   :  { %p114_p12 = pnand %p113_p11, %p107_p8 }
 0x1dc   :  { %117 = shalt.err (!%p114_p12)
}
 0x1dd   :  { %s118_s28 = scalar_lea.hbm %s177_s1, 16 }
 0x1de   :  { %p119_p13 = scmp.ne.s32.totalorder %s177_s1, %s118_s28  ;;  %p122_p0 = scmp.lt.u32.totalorder %s118_s28, %s177_s1 }
 0x1e0   :  { %p124_p1 = pnand %p122_p0, %p119_p13 }
 0x1e2   :  { %127 = shalt.err (!%p124_p1)
}
 0x1e3   :  { %66 = dma.vmem_to_hbm [thread:$0]  %s61_s23, 16, %s177_s1, [#allocation4], %s133_s17, %s133_s17, %s134_s18  }
 0x1e4   :  { %130 = dma.done.wait [#allocation4], 128  }
 0x1e5   :  { %131 = vsyncadd [#allocation4], 4294967168 }
 0x1e6   :  { %70 = vsyncpa [#allocation3], 1 }
 0x1e7   :  { %71 = vsyncpa [#allocation4], 1 }

</bundles_post_ra>
